<compile_context>
chip_gen: v6e
topology: v6e:2x2x1
jax: 0.10.0
libtpu: 0.0.40
codegen_flags: <defaults>
</compile_context>

<pallas_src>
import jax
import jax.numpy as jnp
import numpy as np
from jax.experimental import pallas as pl
from jax.experimental.pallas import tpu as pltpu


def entity_embedding_kernel(x_ref, w_ref, o_ref):
    # x_ref: (TB, S)  int32   -- indices for TB batch rows (lane axis = S)
    # w_ref: (V, Hp)  float32 -- full embedding table (H padded to 128), resident
    # o_ref: (TB, Hp) float32 -- mean embeddings for this batch tile
    x = x_ref[...]                                   # (TB, S)
    tb, s_len = x.shape
    v = w_ref.shape[0]

    # counts[b, v] = (#s : x[b, s] == v) / S   (mean over S folded in pre-matmul)
    ids = jax.lax.broadcasted_iota(jnp.int32, (tb, v), 1)   # (TB, V)
    counts = jnp.zeros((tb, v), jnp.float32)
    for s in range(s_len):            # S is a small compile-time constant; unrolled
        counts = counts + (ids == x[:, s:s + 1]).astype(jnp.float32)
    counts = counts * jnp.float32(1.0 / s_len)               # (TB, V)

    # Single MXU matmul per batch tile: (TB, V) @ (V, Hp) -> (TB, Hp), f32 acc.
    o_ref[...] = jnp.dot(counts, w_ref[...], preferred_element_type=jnp.float32)


def entity_embedding(x, weights):
    """x: (B, input_size) integer indices; weights: (vocab_size, hidden_size) f32.

    Returns (B, hidden_size) f32 = mean over input_size of the gathered embeddings.
    """
    B, S = x.shape
    V, H = weights.shape

    # Lane-dense padded hidden dim; sublane-aligned batch tile (128 at large B).
    Hp = ((H + 127) // 128) * 128
    TB = 128 if B >= 128 else ((B + 7) // 8) * 8
    Bp = ((B + TB - 1) // TB) * TB

    x_p = jnp.zeros((Bp, S), jnp.int32).at[:B].set(x.astype(jnp.int32))
    w_p = jnp.pad(weights.astype(jnp.float32), ((0, 0), (0, Hp - H)))

    # Explicit VMEM budget: double-buffered weights + index/output tiles + headroom.
    vmem_bytes = 2 * V * Hp * 4 + 2 * TB * S * 4 + 2 * TB * Hp * 4 + (4 << 20)
    vmem_bytes = int(min(max(vmem_bytes, 16 << 20), 64 << 20))
    # TODO(synk): for realistic vocab sizes (table approaching the VMEM budget),
    # switch to a V-tiled 'arbitrary' reduction axis or an SMEM-indexed HBM row
    # gather (weights in pl.ANY + manual DMA) instead of a resident counts matmul.

    out = pl.pallas_call(
        entity_embedding_kernel,
        out_shape=jax.ShapeDtypeStruct((Bp, Hp), jnp.float32),
        grid_spec=pltpu.PrefetchScalarGridSpec(
            num_scalar_prefetch=0,
            grid=(Bp // TB,),
            in_specs=[
                pl.BlockSpec((TB, S), lambda b: (b, 0)),     # batch tile of indices
                pl.BlockSpec((V, Hp), lambda b: (0, 0)),     # full (padded) table
            ],
            out_specs=pl.BlockSpec((TB, Hp), lambda b: (b, 0)),
        ),
        compiler_params=pltpu.CompilerParams(
            dimension_semantics=("parallel",),
            vmem_limit_bytes=vmem_bytes),
    )(x_p, w_p)
    return out[:B, :H]                                       # strip padding -> (B, H)


def make_weights(key, vocab_size, hidden_size):
    # kaiming_uniform_ with a=sqrt(5) on a (vocab_size, hidden_size) tensor:
    # fan_in = hidden_size, gain = sqrt(2 / (1 + 5)) = sqrt(1/3),
    # bound = gain * sqrt(3 / fan_in) = 1 / sqrt(fan_in)
    bound = 1.0 / np.sqrt(hidden_size)
    return jax.random.uniform(
        key, (vocab_size, hidden_size), dtype=jnp.float32,
        minval=-bound, maxval=bound)


if __name__ == "__main__":
    B, input_size, vocab_size, hidden_size = 2, 8, 32, 32

    key = jax.random.PRNGKey(0)
    k_w, k_x = jax.random.split(key)
    weights = make_weights(k_w, vocab_size, hidden_size)
    x = jax.random.randint(k_x, (B, input_size), 0, vocab_size, dtype=jnp.int32)

    out = jax.block_until_ready(entity_embedding(x, weights))

    # Pure-JAX reference: one-hot -> matmul -> mean over input_size.
    onehot_ref = jax.nn.one_hot(x, vocab_size, dtype=jnp.float32)       # (B, S, V)
    ref = jnp.mean(jnp.einsum("bsv,vh->bsh", onehot_ref, weights), axis=1)

    np.testing.assert_allclose(np.asarray(out), np.asarray(ref), rtol=1e-5, atol=1e-5)
    assert out.shape == (B, hidden_size) and out.dtype == jnp.float32
    print("KERNEL_OK")
</pallas_src>

<mosaic_0001>
module attributes {stable_mosaic.version = 11 : i64} {
  func.func @entity_embedding_kernel(%arg0: i32, %arg1: memref<8x8xi32, #tpu.memory_space<vmem>>, %arg2: memref<32x128xf32, #tpu.memory_space<vmem>>, %arg3: memref<8x128xf32, #tpu.memory_space<vmem>>) attributes {dimension_semantics = [#tpu.dimension_semantics<parallel>], iteration_bounds = array<i64: 1>, scalar_prefetch = 0 : i64, scratch_operands = 0 : i64, tpu.core_type = #tpu.core_type<tc>, window_params = [{transform_indices = @transform_0, window_bounds = array<i64: 8, 8>}, {pipeline_mode = #tpu.pipeline_mode<synchronous>, transform_indices = @transform_1, window_bounds = array<i64: 32, 128>}, {transform_indices = @transform_2, window_bounds = array<i64: 8, 128>}]} {
    %c0 = arith.constant 0 : index
    %c0_0 = arith.constant 0 : index
    %0 = vector.load %arg1[%c0, %c0_0] : memref<8x8xi32, #tpu.memory_space<vmem>>, vector<8x8xi32>
    %1 = tpu.iota {dimensions = array<i32: 1>} : vector<8x32xi32>
    %cst = arith.constant 0.000000e+00 : f32
    %2 = vector.broadcast %cst : f32 to vector<8x32xf32>
    %3 = vector.extract_strided_slice %0 {offsets = [0, 0], sizes = [8, 1], strides = [1, 1]} : vector<8x8xi32> to vector<8x1xi32>
    %4 = vector.broadcast %3 : vector<8x1xi32> to vector<8x32xi32>
    %5 = arith.cmpi eq, %1, %4 : vector<8x32xi32>
    %6 = arith.extui %5 : vector<8x32xi1> to vector<8x32xi32>
    %7 = arith.sitofp %6 : vector<8x32xi32> to vector<8x32xf32>
    %8 = arith.addf %2, %7 : vector<8x32xf32>
    %9 = vector.extract_strided_slice %0 {offsets = [0, 1], sizes = [8, 1], strides = [1, 1]} : vector<8x8xi32> to vector<8x1xi32>
    %10 = vector.broadcast %9 : vector<8x1xi32> to vector<8x32xi32>
    %11 = arith.cmpi eq, %1, %10 : vector<8x32xi32>
    %12 = arith.extui %11 : vector<8x32xi1> to vector<8x32xi32>
    %13 = arith.sitofp %12 : vector<8x32xi32> to vector<8x32xf32>
    %14 = arith.addf %8, %13 : vector<8x32xf32>
    %15 = vector.extract_strided_slice %0 {offsets = [0, 2], sizes = [8, 1], strides = [1, 1]} : vector<8x8xi32> to vector<8x1xi32>
    %16 = vector.broadcast %15 : vector<8x1xi32> to vector<8x32xi32>
    %17 = arith.cmpi eq, %1, %16 : vector<8x32xi32>
    %18 = arith.extui %17 : vector<8x32xi1> to vector<8x32xi32>
    %19 = arith.sitofp %18 : vector<8x32xi32> to vector<8x32xf32>
    %20 = arith.addf %14, %19 : vector<8x32xf32>
    %21 = vector.extract_strided_slice %0 {offsets = [0, 3], sizes = [8, 1], strides = [1, 1]} : vector<8x8xi32> to vector<8x1xi32>
    %22 = vector.broadcast %21 : vector<8x1xi32> to vector<8x32xi32>
    %23 = arith.cmpi eq, %1, %22 : vector<8x32xi32>
    %24 = arith.extui %23 : vector<8x32xi1> to vector<8x32xi32>
    %25 = arith.sitofp %24 : vector<8x32xi32> to vector<8x32xf32>
    %26 = arith.addf %20, %25 : vector<8x32xf32>
    %27 = vector.extract_strided_slice %0 {offsets = [0, 4], sizes = [8, 1], strides = [1, 1]} : vector<8x8xi32> to vector<8x1xi32>
    %28 = vector.broadcast %27 : vector<8x1xi32> to vector<8x32xi32>
    %29 = arith.cmpi eq, %1, %28 : vector<8x32xi32>
    %30 = arith.extui %29 : vector<8x32xi1> to vector<8x32xi32>
    %31 = arith.sitofp %30 : vector<8x32xi32> to vector<8x32xf32>
    %32 = arith.addf %26, %31 : vector<8x32xf32>
    %33 = vector.extract_strided_slice %0 {offsets = [0, 5], sizes = [8, 1], strides = [1, 1]} : vector<8x8xi32> to vector<8x1xi32>
    %34 = vector.broadcast %33 : vector<8x1xi32> to vector<8x32xi32>
    %35 = arith.cmpi eq, %1, %34 : vector<8x32xi32>
    %36 = arith.extui %35 : vector<8x32xi1> to vector<8x32xi32>
    %37 = arith.sitofp %36 : vector<8x32xi32> to vector<8x32xf32>
    %38 = arith.addf %32, %37 : vector<8x32xf32>
    %39 = vector.extract_strided_slice %0 {offsets = [0, 6], sizes = [8, 1], strides = [1, 1]} : vector<8x8xi32> to vector<8x1xi32>
    %40 = vector.broadcast %39 : vector<8x1xi32> to vector<8x32xi32>
    %41 = arith.cmpi eq, %1, %40 : vector<8x32xi32>
    %42 = arith.extui %41 : vector<8x32xi1> to vector<8x32xi32>
    %43 = arith.sitofp %42 : vector<8x32xi32> to vector<8x32xf32>
    %44 = arith.addf %38, %43 : vector<8x32xf32>
    %45 = vector.extract_strided_slice %0 {offsets = [0, 7], sizes = [8, 1], strides = [1, 1]} : vector<8x8xi32> to vector<8x1xi32>
    %46 = vector.broadcast %45 : vector<8x1xi32> to vector<8x32xi32>
    %47 = arith.cmpi eq, %1, %46 : vector<8x32xi32>
    %48 = arith.extui %47 : vector<8x32xi1> to vector<8x32xi32>
    %49 = arith.sitofp %48 : vector<8x32xi32> to vector<8x32xf32>
    %50 = arith.addf %44, %49 : vector<8x32xf32>
    %cst_1 = arith.constant 1.250000e-01 : f32
    %51 = vector.broadcast %cst_1 : f32 to vector<8x32xf32>
    %52 = arith.mulf %50, %51 : vector<8x32xf32>
    %c0_2 = arith.constant 0 : index
    %c0_3 = arith.constant 0 : index
    %53 = vector.load %arg2[%c0_2, %c0_3] : memref<32x128xf32, #tpu.memory_space<vmem>>, vector<32x128xf32>
    %cst_4 = arith.constant dense<0.000000e+00> : vector<8x128xf32>
    %54 = tpu.matmul %52, %53, %cst_4 {dimension_numbers = #tpu.dot_dimension_numbers<[1], [0], [0], [1], [0, 0, 1, 1], [], []>} : vector<8x32xf32>, vector<32x128xf32>, vector<8x128xf32> -> vector<8x128xf32>
    %c0_5 = arith.constant 0 : index
    %c0_6 = arith.constant 0 : index
    %55 = vector.load %arg3[%c0_5, %c0_6] : memref<8x128xf32, #tpu.memory_space<vmem>>, vector<8x128xf32>
    tpu.vector_store %arg3[%c0_5, %c0_6], %54 {strides = array<i32>} : memref<8x128xf32, #tpu.memory_space<vmem>>, vector<8x128xf32>,
    return
  }
  func.func @transform_0(%arg0: i32) -> (i32, i32) {
    %c0_i32 = arith.constant 0 : i32
    %c0_i32_0 = arith.constant 0 : i32
    return %arg0, %c0_i32 : i32, i32
  }
  func.func @transform_1(%arg0: i32) -> (i32, i32) {
    %c0_i32 = arith.constant 0 : i32
    %c0_i32_0 = arith.constant 0 : i32
    %c0_i32_1 = arith.constant 0 : i32
    return %c0_i32, %c0_i32_0 : i32, i32
  }
  func.func @transform_2(%arg0: i32) -> (i32, i32) {
    %c0_i32 = arith.constant 0 : i32
    %c0_i32_0 = arith.constant 0 : i32
    return %arg0, %c0_i32 : i32, i32
  }
}

</mosaic_0001>

<bundles_post_ra>
// kernel: tpu_custom_call.1
= control target key start
LH: loop header
LB: loop body
LE: loop exit
PB: predicated region body
PF: predicated region fallthrough
CT: control target
= control target key end

     0   :  { %7 = vsyncpa [#allocation3], 0  ;;  %s360_s0 = inlined_call_operand.hbm [shape: s32[8,8], index: 0, kind: input, shape index: {}]   ;;  %s361_s1 = inlined_call_operand.hbm [shape: f32[32,128], index: 1, kind: input, shape index: {}]   ;;  %s362_s2 = inlined_call_operand.hbm [shape: f32[8,128], index: 2, kind: output, shape index: {}]  }
   0x1   :  { %8 = vsyncpa [#allocation6], 0 }
   0x2   :  { %9 = vsyncpa [#allocation4], 0  ;;  %s308_s9 = smov [#allocation2]   ;;  %s309_s11 = smov [#allocation5]  }
   0x3   :  { %s16_s10 = sshll.u32 %s308_s9, 4  ;;  %s25_s12 = sshll.u32 %s309_s11, 4  ;;  %s17_s10 = int_to_ptr.vmem [resolvable:$true] %s16_s10  ;;  %s26_s12 = int_to_ptr.vmem [resolvable:$true] %s25_s12 }
   0x4   :  { %s250_s13 = scalar_lea.vmem %s17_s10, 128  ;;  %p255_p1 = scmp.lt.s32.totalorder %s17_s10, %s17_s10 }
   0x5   :  { %p251_p0 = scmp.ne.s32.totalorder %s17_s10, %s250_s13  ;;  %p256_p2 = scmp.lt.s32.totalorder %s250_s13, %s250_s13 }
   0x7   :  { %p257_p3 = por %p256_p2, %p255_p1 }
   0x9   :  { %p258_p4 = pnand %p257_p3, %p251_p0 }
   0xb   :  { %261 = shalt.err (!%p258_p4)
}
   0xc   :  { %19 = dma.hbm_to_vmem [thread:$0]  %s360_s0, 128, %s17_s10, [#allocation3]  }
   0xd   :  { %s270_s16 = scalar_lea.vmem %s26_s12, 512  ;;  %p275_p6 = scmp.lt.s32.totalorder %s26_s12, %s26_s12 }
   0xe   :  { %p271_p5 = scmp.ne.s32.totalorder %s26_s12, %s270_s16  ;;  %p276_p7 = scmp.lt.s32.totalorder %s270_s16, %s270_s16 }
  0x10   :  { %p277_p8 = por %p276_p7, %p275_p6 }
  0x12   :  { %p278_p9 = pnand %p277_p8, %p271_p5 }
  0x14   :  { %281 = shalt.err (!%p278_p9)
}
  0x15   :  { %s310_s17 = smov 128   ;;  %s311_s18 = smov 8  }
  0x16   :  { %31 = dma.hbm_to_vmem [thread:$0]  %s361_s1, 512, %s26_s12, [#allocation6], %s310_s17, %s310_s17, %s311_s18  }
  0x17   :  { %302 = dma.done.wait [#allocation3], 128  }
  0x18   :  { %303 = vsyncadd [#allocation3], 4294967168 }
  0x19   :  { %304 = dma.done.wait [#allocation6], 512  }
  0x1a   :  { %305 = vsyncadd [#allocation6], 4294966784  ;;  %v312_v0 = vmov 2   ;;  %v313_v1 = vmov 0   ;;  %v314_v2 = vmov 0.0   ;;  %v38_v3 = vld [vmem:[#allocation2] sm:$0xff]  ;;  %v39_v14 = vlaneseq }
  0x1b   :  { %235 = vset.pattern.permute.xlu1 %v312_v0  ;;  %233 = vset.pattern.permute.xlu0 %v313_v1  ;;  %v315_v4 = vmov 3   ;;  %v316_v5 = vmov 1   ;;  %v317_v6 = vmov 4   ;;  %v318_v7 = vmov 5   ;;  %v101_v8 = vld [vmem:[#allocation5 + $0x18] sm:$0xff]  ;;  %v100_v10 = vld [vmem:[#allocation5 + $0x10] sm:$0xff] }
  0x1c   :  { %207 = vmatprep.subr.mxu0 %v314_v2  ;;  %56 = vperm.xlu1 %235, %v38_v3   ;;  %v319_v9 = vmov 6   ;;  %v320_v11 = vmov 7   ;;  %v99_v12 = vld [vmem:[#allocation5 + $0x8] sm:$0xff]  ;;  %v98_v13 = vld [vmem:[#allocation5] sm:$0xff]  ;;  %vm321_vm0 = vmmov 0   ;;  %v40_v17 = vand.u32 127, %v39_v14 }
  0x1d   :  { %42 = vperm.xlu0 %233, %v38_v3   ;;  %208 = vmatpush3.msra.mxu0 %v101_v8  ;;  %vm102_vm9 = vcmask 261120   ;;  %s322_s0 = smov [#allocation7]  }
  0x1e   :  { %209 = vmatprep.subr.mxu0 %v314_v2  ;;  %215 = vmatprep.mubr.msk.f32.mxu0 %vm321_vm0, %v314_v2  ;;  %s183_s1 = sshll.u32 %s322_s0, 4  ;;  %s184_s1 = int_to_ptr.vmem [resolvable:$true] %s183_s1 }
  0x1f   :  { %210 = vmatpush3.msra.mxu0 %v100_v10  ;;  %s282_s21 = scalar_lea.vmem %s184_s1, 128  ;;  %p287_p11 = scmp.lt.s32.totalorder %s184_s1, %s184_s1 }
  0x20   :  { %236 = vset.pattern.permute.xlu1 %v315_v4  ;;  %211 = vmatprep.subr.mxu0 %v314_v2  ;;  %p283_p10 = scmp.ne.s32.totalorder %s184_s1, %s282_s21  ;;  %p288_p12 = scmp.lt.s32.totalorder %s282_s21, %s282_s21 }
  0x21   :  { %234 = vset.pattern.permute.xlu0 %v316_v5  ;;  %63 = vperm.xlu1 %236, %v38_v3  }
  0x22   :  { %49 = vperm.xlu0 %234, %v38_v3   ;;  %212 = vmatpush3.msra.mxu0 %v99_v12  ;;  %p289_p13 = por %p288_p12, %p287_p11 }
  0x23   :  { %213 = vmatprep.subr.mxu0 %v314_v2 }
  0x24   :  { %214 = vmatpush3.msra.mxu0 %v98_v13  ;;  %p290_p0 = pnand %p289_p13, %p283_p10 }
  0x25   :  { %237 = vset.pattern.permute.xlu1 %v317_v6 }
  0x26   :  { %238 = vset.pattern.permute.xlu0 %v318_v7  ;;  %70 = vperm.xlu1 %237, %v38_v3  }
  0x27   :  { %77 = vperm.xlu0 %238, %v38_v3  }
  0x2a   :  { %239 = vset.pattern.permute.xlu1 %v319_v9 }
  0x2b   :  { %84 = vperm.xlu1 %239, %v38_v3   ;;  %241 = vset.pattern.permute.xlu0 %v320_v11 }
  0x2f   :  { %240 = vset.pattern.permute.xlu1 %v320_v11 }
  0x30   :  { %91 = vperm.xlu1 %240, %v38_v3  }
  0x97   :  { %v57_v15 = vpop.permute.xlu1 %56 }
  0x98   :  { %v43_v16 = vpop.permute.xlu0 %42  ;;  %vm58_vm2 = vcmp.eq.s32.totalorder %v40_v17, %v57_v15 }
  0x99   :  { %vm44_vm1 = vcmp.eq.s32.totalorder %v40_v17, %v43_v16  ;;  %v195_v23 = vsel %vm58_vm2, 1.0, %v314_v2 }
  0x9a   :  { %v193_v20 = vsel %vm44_vm1, 1.0, %v314_v2 }
  0x9c   :  { %v64_v18 = vpop.permute.xlu1 %63 }
  0x9d   :  { %v50_v19 = vpop.permute.xlu0 %49  ;;  %vm65_vm4 = vcmp.eq.s32.totalorder %v40_v17, %v64_v18 }
  0x9e   :  { %vm51_vm3 = vcmp.eq.s32.totalorder %v40_v17, %v50_v19  ;;  %v196_v27 = vsel %vm65_vm4, 1.0, %v314_v2 }
  0x9f   :  { %v194_v21 = vsel %vm51_vm3, 1.0, %v314_v2 }
  0xa0   :  { %v54_v22 = vadd.f32 %v194_v21, %v193_v20 }
  0xa1   :  { %v71_v25 = vpop.permute.xlu1 %70 }
  0xa2   :  { %v61_v24 = vadd.f32 %v195_v23, %v54_v22  ;;  %v78_v26 = vpop.permute.xlu0 %77  ;;  %vm72_vm5 = vcmp.eq.s32.totalorder %v40_v17, %v71_v25 }
  0xa3   :  { %vm79_vm6 = vcmp.eq.s32.totalorder %v40_v17, %v78_v26  ;;  %v197_v29 = vsel %vm72_vm5, 1.0, %v314_v2 }
  0xa4   :  { %v68_v28 = vadd.f32 %v196_v27, %v61_v24  ;;  %v198_v31 = vsel %vm79_vm6, 1.0, %v314_v2 }
  0xa6   :  { %v75_v30 = vadd.f32 %v197_v29, %v68_v28  ;;  %v85_v32 = vpop.permute.xlu1 %84 }
  0xa7   :  { %vm86_vm7 = vcmp.eq.s32.totalorder %v40_v17, %v85_v32 }
  0xa8   :  { %v82_v33 = vadd.f32 %v198_v31, %v75_v30  ;;  %v199_v34 = vsel %vm86_vm7, 1.0, %v314_v2 }
  0xaa   :  { %v89_v36 = vadd.f32 %v199_v34, %v82_v33 }
  0xab   :  { %v92_v35 = vpop.permute.xlu1 %91 }
  0xac   :  { %vm93_vm8 = vcmp.eq.s32.totalorder %v40_v17, %v92_v35 }
  0xad   :  { %v200_v37 = vsel %vm93_vm8, 1.0, %v314_v2 }
  0xae   :  { %v96_v38 = vadd.f32 %v200_v37, %v89_v36 }
  0xb0   :  { %v97_v39 = vmul.f32 0.125, %v96_v38 }
  0xb2   :  { %216 = vmatmul.mubr.msk.f32.vlgmr.msra.gmra.mxu0 %vm102_vm9, %v97_v39 }
 0x172   :  { %v172_v40 = vpop.f32.mrf.mxu0 }
 0x173   :  { %176 = vst [vmem:[#allocation7] sm:$0xff] %v172_v40 }
 0x174   :  { %v217_v41 = vpop.f32.mrf.mxu0 }
 0x175   :  { %293 = shalt.err (!%p290_p0)
}
 0x176   :  { %186 = dma.vmem_to_hbm [thread:$0]  %s184_s1, 128, %s362_s2, [#allocation4]  }
 0x177   :  { %306 = dma.done.wait [#allocation4], 128  }
 0x178   :  { %307 = vsyncadd [#allocation4], 4294967168 }
 0x179   :  { %190 = vsyncpa [#allocation3], 1 }
 0x17a   :  { %191 = vsyncpa [#allocation6], 1 }
 0x17b   :  { %192 = vsyncpa [#allocation4], 1 }

</bundles_post_ra>
